<compile_context>
chip_gen: v5e
topology: v5e:2x2
jax: 0.10.0
libtpu: 0.0.40
codegen_flags: <defaults>
</compile_context>

<pallas_src>
import jax
import jax.numpy as jnp
from jax.experimental import pallas as pl
from jax.experimental.pallas import tpu as pltpu


# ------------------------------ kernels ------------------------------------

def _posenc_kernel_3d(x_ref, emb_ref, o_ref):
    # x_ref: (b, TT, d), emb_ref: (TT, d), o_ref: (b, TT, d)
    o_ref[...] = (x_ref[...] + emb_ref[...]).astype(o_ref.dtype)


def _posenc_kernel_2d(x_ref, emb_ref, o_ref):
    # Lane-dense path: x_ref: (b, LT), emb_ref: (1, LT), o_ref: (b, LT)
    o_ref[...] = (x_ref[...] + emb_ref[...]).astype(o_ref.dtype)


# ------------------------------ tiling helpers ------------------------------

def _divisors(n):
    ds = set()
    i = 1
    while i * i <= n:
        if n % i == 0:
            ds.add(i)
            ds.add(n // i)
        i += 1
    return sorted(ds)


def _pick_tile(n, max_tile, align):
    """Largest divisor of n that is <= max_tile and a multiple of `align`."""
    cands = [v for v in _divisors(n) if v <= max_tile and v % align == 0]
    return max(cands) if cands else None


# ------------------------------ wrapper ------------------------------------

def pos_enc(x, emb_table, *, tile_budget_bytes=16 << 20, vmem_limit_bytes=48 << 20):
    """x: (b, t, d);  emb_table: (t_max, dim) with dim == d.

    Returns (1, b, t, d), matching the PyTorch 3-D + 4-D broadcast result.
    """
    b, t, d = x.shape
    t_max, dim = emb_table.shape
    assert dim == d and t <= t_max

    out_dtype = jnp.result_type(x.dtype, emb_table.dtype)
    isz = max(x.dtype.itemsize, emb_table.dtype.itemsize,
              jnp.dtype(out_dtype).itemsize)

    compiler_params = pltpu.CompilerParams(
        dimension_semantics=("parallel",),
        vmem_limit_bytes=vmem_limit_bytes,
    )

    if d % 128 == 0:
        # ---- Path A: (b, TT, d) blocks, emb tiles read directly from the
        # full table (no wrapper-side slice, no extra HBM pass on the table).
        per_row = 2 * (2 * b + 1) * d * isz        # double-buffered bytes / t-row
        tt = _pick_tile(t, max(1, tile_budget_bytes // per_row), 8)
        if tt is None:
            tt = t                                  # full-t block (always legal)

        emb_in = emb_table
        if tt % 8 != 0 and tt != t_max:
            # Block (tt, d) would violate the (8, 128) rule against (t_max, d);
            # fall back to a one-off (t, d) slice so block dims equal full dims.
            emb_in = emb_table[:t]

        out3 = pl.pallas_call(
            _posenc_kernel_3d,
            out_shape=jax.ShapeDtypeStruct((b, t, d), out_dtype),
            grid_spec=pltpu.PrefetchScalarGridSpec(
                num_scalar_prefetch=0,
                grid=(t // tt,),
                in_specs=[
                    pl.BlockSpec((b, tt, d), lambda j: (0, j, 0)),
                    pl.BlockSpec((tt, d), lambda j: (j, 0)),
                ],
                out_specs=pl.BlockSpec((b, tt, d), lambda j: (0, j, 0)),
            ),
            compiler_params=compiler_params,
        )(x, emb_in)
        return out3.reshape(1, b, t, d)

    # ---- Path B: d is not lane-aligned; flatten (t, d) -> t*d so the kernel
    # sees a lane-dense last axis (unmasked full-lane stores).
    n = t * d
    per_lane = 2 * (2 * b + 1) * isz               # double-buffered bytes / column
    lt = _pick_tile(n, max(1, tile_budget_bytes // per_lane), 128)
    if lt is None:
        lt = n                                      # full block (always legal)

    x2 = x.reshape(b, n)                            # metadata-only reshape
    emb2 = emb_table[:t].reshape(1, n)              # one small (t, d) copy

    out2 = pl.pallas_call(
        _posenc_kernel_2d,
        out_shape=jax.ShapeDtypeStruct((b, n), out_dtype),
        grid_spec=pltpu.PrefetchScalarGridSpec(
            num_scalar_prefetch=0,
            grid=(n // lt,),
            in_specs=[
                pl.BlockSpec((b, lt), lambda j: (0, j)),
                pl.BlockSpec((1, lt), lambda j: (0, j)),
            ],
            out_specs=pl.BlockSpec((b, lt), lambda j: (0, j)),
        ),
        compiler_params=compiler_params,
    )(x2, emb2)
    return out2.reshape(1, b, t, d)


# ------------------------------ self-test ----------------------------------

if __name__ == "__main__":
    key = jax.random.PRNGKey(0)

    # Case 1: small module-consistent shapes (d=32 -> lane-dense flattened path).
    b, t, d, t_max = 2, 8, 32, 16
    kx, ke, kx2, ke2 = jax.random.split(key, 4)
    x = jax.random.normal(kx, (b, t, d), dtype=jnp.float32)
    emb_table = jax.random.normal(ke, (t_max, d), dtype=jnp.float32)

    out = jax.block_until_ready(pos_enc(x, emb_table))
    ref = x[None] + emb_table[:t][None, None]       # (1, b, t, d)
    assert out.shape == (1, b, t, d)
    assert jnp.allclose(out, ref, atol=1e-6), "mismatch vs reference (path B)"

    # Case 2: lane-aligned feature dim (d=128 -> direct-table 3-D path).
    b2, t2, d2, t_max2 = 2, 8, 128, 16
    x_b = jax.random.normal(kx2, (b2, t2, d2), dtype=jnp.float32)
    emb_b = jax.random.normal(ke2, (t_max2, d2), dtype=jnp.float32)

    out_b = jax.block_until_ready(pos_enc(x_b, emb_b))
    ref_b = x_b[None] + emb_b[:t2][None, None]
    assert out_b.shape == (1, b2, t2, d2)
    assert jnp.allclose(out_b, ref_b, atol=1e-6), "mismatch vs reference (path A)"

    print("KERNEL_OK")
</pallas_src>

<mosaic_0001>
module attributes {stable_mosaic.version = 11 : i64} {
  func.func @_posenc_kernel_2d(%arg0: i32, %arg1: memref<2x256xf32, #tpu.memory_space<vmem>>, %arg2: memref<1x256xf32, #tpu.memory_space<vmem>>, %arg3: memref<2x256xf32, #tpu.memory_space<vmem>>) attributes {dimension_semantics = [#tpu.dimension_semantics<parallel>], iteration_bounds = array<i64: 1>, scalar_prefetch = 0 : i64, scratch_operands = 0 : i64, tpu.core_type = #tpu.core_type<tc>, window_params = [{transform_indices = @transform_0, window_bounds = array<i64: 2, 256>}, {transform_indices = @transform_1, window_bounds = array<i64: 1, 256>}, {transform_indices = @transform_2, window_bounds = array<i64: 2, 256>}]} {
    %c0 = arith.constant 0 : index
    %c0_0 = arith.constant 0 : index
    %0 = vector.load %arg1[%c0, %c0_0] : memref<2x256xf32, #tpu.memory_space<vmem>>, vector<2x256xf32>
    %c0_1 = arith.constant 0 : index
    %c0_2 = arith.constant 0 : index
    %1 = vector.load %arg2[%c0_1, %c0_2] : memref<1x256xf32, #tpu.memory_space<vmem>>, vector<1x256xf32>
    %2 = vector.broadcast %1 : vector<1x256xf32> to vector<2x256xf32>
    %3 = arith.addf %0, %2 : vector<2x256xf32>
    %c0_3 = arith.constant 0 : index
    %c0_4 = arith.constant 0 : index
    %4 = vector.load %arg3[%c0_3, %c0_4] : memref<2x256xf32, #tpu.memory_space<vmem>>, vector<2x256xf32>
    tpu.vector_store %arg3[%c0_3, %c0_4], %3 {strides = array<i32>} : memref<2x256xf32, #tpu.memory_space<vmem>>, vector<2x256xf32>,
    return
  }
  func.func @transform_0(%arg0: i32) -> (i32, i32) {
    %c0_i32 = arith.constant 0 : i32
    %c0_i32_0 = arith.constant 0 : i32
    return %c0_i32, %arg0 : i32, i32
  }
  func.func @transform_1(%arg0: i32) -> (i32, i32) {
    %c0_i32 = arith.constant 0 : i32
    %c0_i32_0 = arith.constant 0 : i32
    return %c0_i32, %arg0 : i32, i32
  }
  func.func @transform_2(%arg0: i32) -> (i32, i32) {
    %c0_i32 = arith.constant 0 : i32
    %c0_i32_0 = arith.constant 0 : i32
    return %c0_i32, %arg0 : i32, i32
  }
}

</mosaic_0001>

<bundles_post_ra>
// kernel: tpu_custom_call.1
= control target key start
LH: loop header
LB: loop body
LE: loop exit
PB: predicated region body
PF: predicated region fallthrough
CT: control target
= control target key end

     0   :  { %7 = vsyncpa [#allocation3], 0  ;;  %s177_s0 = inlined_call_operand.hbm [shape: f32[2,256], index: 0, kind: input, shape index: {}]   ;;  %s178_s1 = inlined_call_operand.hbm [shape: f32[1,256], index: 1, kind: input, shape index: {}]   ;;  %s179_s2 = inlined_call_operand.hbm [shape: f32[2,256], index: 2, kind: output, shape index: {}]  }
   0x1   :  { %8 = vsyncpa [#allocation6], 0 }
   0x2   :  { %9 = vsyncpa [#allocation4], 0  ;;  %s15_s11 = sshll.u32 %s177_s0, 4  ;;  %s150_s12 = smov [#allocation2]   ;;  %s16_s11 = int_to_ptr.hbm [resolvable:$true] %s15_s11 }
   0x3   :  { %s17_s13 = sshll.u32 %s150_s12, 4  ;;  %s26_s16 = sshll.u32 %s178_s1, 4  ;;  %s18_s13 = int_to_ptr.vmem [resolvable:$true] %s17_s13  ;;  %s27_s16 = int_to_ptr.hbm [resolvable:$true] %s26_s16 }
   0x4   :  { %20 = dma.hbm_to_vmem [thread:$0]  %s16_s11, 64, %s18_s13, [#allocation3]  }
   0x5   :  { %s151_s17 = smov [#allocation5]  }
   0x6   :  { %s28_s18 = sshll.u32 %s151_s17, 4  ;;  %s29_s18 = int_to_ptr.vmem [resolvable:$true] %s28_s18 }
   0x7   :  { %31 = dma.hbm_to_vmem [thread:$0]  %s27_s16, 32, %s29_s18, [#allocation6]  }
   0x8   :  { %144 = dma.done.wait [#allocation3], 64  }
   0x9   :  { %145 = vsyncadd [#allocation3], 4294967232 }
   0xa   :  { %146 = dma.done.wait [#allocation6], 32  }
   0xb   :  { %147 = vsyncadd [#allocation6], 4294967264  ;;  %v41_v0 = vld [vmem:[#allocation5] sm:$0x3]  ;;  %vm46_vm0 = vcmask 1041408   ;;  %s152_s0 = smov [#allocation7]  }
   0xc   :  { %v43_v1 = vperm.slane %v41_v0, 0  ;;  %v44_v2 = vperm.slane %v41_v0, 1  ;;  %v40_v3 = vld [vmem:[#allocation2] sm:$0xf]  ;;  %s56_s19 = sshll.u32 %s152_s0, 4  ;;  %s58_s21 = sshll.u32 %s179_s2, 4  ;;  %s57_s19 = int_to_ptr.vmem [resolvable:$true] %s56_s19  ;;  %s59_s21 = int_to_ptr.hbm [resolvable:$true] %s58_s21 }
   0xe   :  { %v45_v4 = vrot.slane %v44_v2, 6 }
  0x10   :  { %v47_v5 = vsel %vm46_vm0, %v43_v1, %v45_v4 }
  0x11   :  { %v49_v6 = vadd.f32 %v47_v5, %v40_v3 }
  0x13   :  { %50 = vst [vmem:[#allocation7] sm:$0xf] %v49_v6 }
  0x14   :  { %61 = dma.vmem_to_hbm [thread:$0]  %s57_s19, 64, %s59_s21, [#allocation4]  }
  0x15   :  { %148 = dma.done.wait [#allocation4], 64  }
  0x16   :  { %149 = vsyncadd [#allocation4], 4294967232 }
  0x17   :  { %66 = vsyncpa [#allocation3], 1 }
  0x18   :  { %67 = vsyncpa [#allocation6], 1 }
  0x19   :  { %68 = vsyncpa [#allocation4], 1 }

</bundles_post_ra>
